<compile_context>
chip_gen: v7x
topology: tpu7x:2x2x1
jax: 0.10.0
libtpu: 0.0.40
codegen_flags: <defaults>
</compile_context>

<pallas_src>
import math

import jax
import jax.numpy as jnp
from jax.experimental import pallas as pl
from jax.experimental.pallas import tpu as pltpu

W_DIM = 128
STAB_DIM = 64
COND_DIM = STAB_DIM // 2                      # 32
STYLE_DIM = W_DIM // 3                        # 42
SLAB_DIM = 256                                # lane-dense output width
# slab column layout
OFF_STAB = 0                                  # [0, 64)    stabilized (identity block)
OFF_RUN = STAB_DIM                            # [64, 128)  runoff
OFF_COND = OFF_RUN + STAB_DIM                 # [128, 160) conditioning
OFF_STYLE = OFF_COND + COND_DIM               # [160, 202) style
OFF_PAD = OFF_STYLE + STYLE_DIM               # [202, 255) zero pad
NORM_LANE = SLAB_DIM - 1                      # 255        per-row ||w||_2

LN_EPS = 1e-5
_INV_W_DIM = 1.0 / W_DIM


def _round_up(x, m):
    return ((x + m - 1) // m) * m


def _cdiv(a, b):
    return -(-a // b)


# ----------------------------------------------------------------------------
# Pallas kernel (one batch tile per grid step)
# ----------------------------------------------------------------------------
def _stabilizer_kernel(
    w_ref,       # [TB, W_DIM]            raw w-vectors (batch tile)
    gamma_ref,   # [1, W_DIM]             LayerNorm weight   (resident)
    beta_ref,    # [1, W_DIM]             LayerNorm bias     (resident)
    w1_ref,      # [W_DIM, STAB_DIM]      w_normalizer Linear weight
    b1_ref,      # [1, STAB_DIM]
    wp_ref,      # [STAB_DIM, SLAB_DIM]   fused (I | runoff | cond | style | 0) weight
    bp_ref,      # [1, SLAB_DIM]          fused bias (0 on identity + pad columns)
    slab_ref,    # out: [TB, SLAB_DIM]    [stabilized | runoff | cond | style | 0 | norm]
):
    x = w_ref[...].astype(jnp.float32)

    # --- per-row L2 norm (feeds the host-side magnitude statistics) ----------
    s2 = jnp.sum(x * x, axis=1, keepdims=True)                   # [TB, 1]
    row_norm = jnp.sqrt(s2)

    # --- LayerNorm (two-pass variance: robust when |mean| >> std) ------------
    mu = jnp.sum(x, axis=1, keepdims=True) * _INV_W_DIM
    xc = x - mu
    var = jnp.sum(xc * xc, axis=1, keepdims=True) * _INV_W_DIM   # biased variance
    xn = xc * jax.lax.rsqrt(var + LN_EPS)
    xn = xn * gamma_ref[...] + beta_ref[...]

    # --- Linear(w_dim -> stabilized_dim) + Tanh (+ Dropout = identity, eval) -
    h = jnp.tanh(
        jnp.dot(xn, w1_ref[...], preferred_element_type=jnp.float32) + b1_ref[...]
    )

    # --- fused slab matmul: identity block copies h, remaining columns are the
    #     runoff / conditioning / style projections (one MXU push, no concat) --
    slab = jnp.dot(h, wp_ref[...], preferred_element_type=jnp.float32) + bp_ref[...]

    # stash the per-row norm into the last (zero-pad) lane: one vreg-wide select
    lane = jax.lax.broadcasted_iota(jnp.int32, slab.shape, 1)
    slab = jnp.where(lane == NORM_LANE, row_norm, slab)

    slab_ref[...] = slab.astype(slab_ref.dtype)


# ----------------------------------------------------------------------------
# Parameter fusion helper
# ----------------------------------------------------------------------------
def fuse_projection_params(params):
    """Builds the fused [64,256] slab weight / bias once (store in params)."""
    eye = jnp.eye(STAB_DIM, dtype=jnp.float32)
    w_slab = jnp.concatenate(
        [eye, params["w_run"], params["w_cond"], params["w_style"]], axis=1)
    w_slab = jnp.pad(w_slab, ((0, 0), (0, SLAB_DIM - w_slab.shape[1])))
    b_slab = jnp.concatenate(
        [jnp.zeros((1, STAB_DIM), jnp.float32),
         params["b_run"], params["b_cond"], params["b_style"]], axis=1)
    b_slab = jnp.pad(b_slab, ((0, 0), (0, SLAB_DIM - b_slab.shape[1])))
    return w_slab, b_slab


# ----------------------------------------------------------------------------
# Wrapper
# ----------------------------------------------------------------------------
def w_space_stabilizer_forward(w_raw, params, *, batch_tile=4096,
                               out_dtype=jnp.float32, return_slab=False):
    """Returns (w_variants dict, w_magnitude scalar array).

    With return_slab=True, returns (slab[:batch], w_magnitude) instead so a
    downstream fused consumer can avoid materializing the four slice copies.
    """
    batch = w_raw.shape[0]

    # --- tile selection: minimize padding, keep sublane-multiple rows --------
    # (for v7x megacore, callers with batch > batch_tile automatically get
    #  >= 2 grid steps so the "parallel" axis splits across both TensorCores)
    num_tiles = max(1, _cdiv(batch, batch_tile))
    tb = _round_up(_cdiv(batch, num_tiles), 8)
    b_pad = tb * num_tiles
    w_in = w_raw if b_pad == batch else jnp.pad(w_raw, ((0, b_pad - batch), (0, 0)))

    # fused projection weight/bias: reuse precomputed copy if present
    if "w_slab" in params and "b_slab" in params:
        w_slab, b_slab = params["w_slab"], params["b_slab"]
    else:
        w_slab, b_slab = fuse_projection_params(params)

    # VMEM budget: double-buffered input tile + output slab tile + margin,
    # clamped to stay inside every generation's physical VMEM (incl. v7x 64MiB).
    vmem_est = 2 * (tb * W_DIM * 4 + tb * SLAB_DIM * 4) + (1 << 20)
    vmem_limit = int(min(max(vmem_est, 16 << 20), 56 << 20))

    grid = (num_tiles,)

    def tiled(shape):
        return pl.BlockSpec(shape, lambda i: (i, 0))

    def resident(shape):
        return pl.BlockSpec(shape, lambda i: (0, 0))

    slab = pl.pallas_call(
        _stabilizer_kernel,
        out_shape=jax.ShapeDtypeStruct((b_pad, SLAB_DIM), out_dtype),
        grid=grid,
        in_specs=[
            tiled((tb, W_DIM)),                 # w_raw (batch-tiled)
            resident((1, W_DIM)),               # ln_gamma
            resident((1, W_DIM)),               # ln_beta
            resident((W_DIM, STAB_DIM)),        # w1
            resident((1, STAB_DIM)),            # b1
            resident((STAB_DIM, SLAB_DIM)),     # fused slab weight (identity block)
            resident((1, SLAB_DIM)),            # fused slab bias
        ],
        out_specs=tiled((tb, SLAB_DIM)),        # single lane-dense output slab
        compiler_params=pltpu.CompilerParams(
            dimension_semantics=("parallel",),
            vmem_limit_bytes=vmem_limit),
    )(
        w_in,
        params["ln_gamma"], params["ln_beta"],
        params["w1"], params["b1"],
        w_slab, b_slab,
    )

    # mean of per-row norms over the *valid* rows only (padding rows excluded).
    w_magnitude = slab[:batch, NORM_LANE].astype(jnp.float32).mean()

    if return_slab:
        return slab[:batch], w_magnitude

    # NOTE: these slices become copies if they escape a jit boundary as four
    # separate arrays; use return_slab=True for a fused downstream consumer.
    w_variants = {
        "raw": w_raw,
        "stabilized": slab[:batch, OFF_STAB:OFF_STAB + STAB_DIM],
        "runoff": slab[:batch, OFF_RUN:OFF_RUN + STAB_DIM],
        "conditioning": slab[:batch, OFF_COND:OFF_COND + COND_DIM],
        "style": slab[:batch, OFF_STYLE:OFF_STYLE + STYLE_DIM],
    }
    return w_variants, w_magnitude


def init_params(key):
    """Deterministic parameter init matching the nn.Module's shapes.

    Linear layers use PyTorch-style U(-1/sqrt(fan_in), 1/sqrt(fan_in)) for both
    weight and bias; LayerNorm uses ones/zeros. The fused slab weight/bias are
    precomputed once here (review item: keep fusion out of the hot path).
    """
    keys = jax.random.split(key, 8)

    def linear(kw, kb, fan_in, fan_out):
        bound = 1.0 / math.sqrt(fan_in)
        w = jax.random.uniform(kw, (fan_in, fan_out), jnp.float32, -bound, bound)
        b = jax.random.uniform(kb, (1, fan_out), jnp.float32, -bound, bound)
        return w, b

    w1, b1 = linear(keys[0], keys[1], W_DIM, STAB_DIM)
    w_run, b_run = linear(keys[2], keys[3], STAB_DIM, STAB_DIM)
    w_cond, b_cond = linear(keys[4], keys[5], STAB_DIM, COND_DIM)
    w_style, b_style = linear(keys[6], keys[7], STAB_DIM, STYLE_DIM)

    params = {
        "ln_gamma": jnp.ones((1, W_DIM), jnp.float32),
        "ln_beta": jnp.zeros((1, W_DIM), jnp.float32),
        "w1": w1, "b1": b1,
        "w_run": w_run, "b_run": b_run,
        "w_cond": w_cond, "b_cond": b_cond,
        "w_style": w_style, "b_style": b_style,
    }
    w_slab, b_slab = fuse_projection_params(params)
    params["w_slab"] = w_slab
    params["b_slab"] = b_slab
    return params


if __name__ == "__main__":
    key = jax.random.PRNGKey(0)
    k_param, k_x = jax.random.split(key)

    params = init_params(k_param)

    batch = 4
    w_raw = jax.random.normal(k_x, (batch, W_DIM), dtype=jnp.float32)

    w_variants, mag = w_space_stabilizer_forward(w_raw, params)
    jax.block_until_ready(w_variants)
    jax.block_until_ready(mag)

    # ---- buffer / stats bookkeeping (host glue, mirrors the module) ---------
    # TODO(synk): training-mode Dropout(0.1) not implemented (eval-mode identity).
    w_magnitude = float(mag)
    w_magnitude_history = jnp.zeros((100,), jnp.float32)
    magnitude_index = 0
    idx = magnitude_index % 100
    w_magnitude_history = w_magnitude_history.at[idx].set(w_magnitude)
    magnitude_index += 1

    if w_magnitude > 10.0:
        print(f"⚠️  W-vector magnitude warning: {w_magnitude:.3f} (may cause cell death)")

    history_slice = w_magnitude_history[: min(100, magnitude_index)]
    magnitude_std = float(jnp.std(history_slice, ddof=1)) if history_slice.shape[0] >= 2 else 0.0
    stats = {
        "current_magnitude": w_magnitude,
        "average_magnitude": float(history_slice.mean()) if history_slice.shape[0] > 0 else 0.0,
        "magnitude_std": magnitude_std,
    }

    # ---- sanity checks vs. a pure-JAX reference ------------------------------
    x = w_raw
    mu = x.mean(axis=1, keepdims=True)
    var = ((x - mu) ** 2).mean(axis=1, keepdims=True)
    xn = (x - mu) / jnp.sqrt(var + LN_EPS) * params["ln_gamma"] + params["ln_beta"]
    h_ref = jnp.tanh(xn @ params["w1"] + params["b1"])
    assert jnp.allclose(w_variants["stabilized"], h_ref, atol=1e-4)
    assert jnp.allclose(w_variants["runoff"], h_ref @ params["w_run"] + params["b_run"], atol=1e-4)
    assert jnp.allclose(w_variants["conditioning"], h_ref @ params["w_cond"] + params["b_cond"], atol=1e-4)
    assert jnp.allclose(w_variants["style"], h_ref @ params["w_style"] + params["b_style"], atol=1e-4)
    assert abs(w_magnitude - float(jnp.linalg.norm(x, axis=1).mean())) < 1e-3

    assert w_variants["stabilized"].shape == (batch, STAB_DIM)
    assert w_variants["runoff"].shape == (batch, STAB_DIM)
    assert w_variants["conditioning"].shape == (batch, COND_DIM)
    assert w_variants["style"].shape == (batch, STYLE_DIM)
    assert isinstance(stats["current_magnitude"], float)

    # fused-slab path (no slice copies) also works
    slab, mag2 = w_space_stabilizer_forward(w_raw, params, return_slab=True)
    jax.block_until_ready(slab)
    assert slab.shape == (batch, SLAB_DIM)
    assert abs(float(mag2) - w_magnitude) < 1e-5

    print("KERNEL_OK")
</pallas_src>

<mosaic_0001>
module attributes {stable_mosaic.version = 11 : i64} {
  func.func @_stabilizer_kernel(%arg0: i32, %arg1: memref<8x128xf32, #tpu.memory_space<vmem>>, %arg2: memref<1x128xf32, #tpu.memory_space<vmem>>, %arg3: memref<1x128xf32, #tpu.memory_space<vmem>>, %arg4: memref<128x64xf32, #tpu.memory_space<vmem>>, %arg5: memref<1x64xf32, #tpu.memory_space<vmem>>, %arg6: memref<64x256xf32, #tpu.memory_space<vmem>>, %arg7: memref<1x256xf32, #tpu.memory_space<vmem>>, %arg8: memref<8x256xf32, #tpu.memory_space<vmem>>) attributes {dimension_semantics = [#tpu.dimension_semantics<parallel>], iteration_bounds = array<i64: 1>, scalar_prefetch = 0 : i64, scratch_operands = 0 : i64, tpu.core_type = #tpu.core_type<tc>, window_params = [{transform_indices = @transform_0, window_bounds = array<i64: 8, 128>}, {pipeline_mode = #tpu.pipeline_mode<synchronous>, transform_indices = @transform_1, window_bounds = array<i64: 1, 128>}, {pipeline_mode = #tpu.pipeline_mode<synchronous>, transform_indices = @transform_2, window_bounds = array<i64: 1, 128>}, {pipeline_mode = #tpu.pipeline_mode<synchronous>, transform_indices = @transform_3, window_bounds = array<i64: 128, 64>}, {pipeline_mode = #tpu.pipeline_mode<synchronous>, transform_indices = @transform_4, window_bounds = array<i64: 1, 64>}, {pipeline_mode = #tpu.pipeline_mode<synchronous>, transform_indices = @transform_5, window_bounds = array<i64: 64, 256>}, {pipeline_mode = #tpu.pipeline_mode<synchronous>, transform_indices = @transform_6, window_bounds = array<i64: 1, 256>}, {transform_indices = @transform_7, window_bounds = array<i64: 8, 256>}]} {
    %c0 = arith.constant 0 : index
    %c0_0 = arith.constant 0 : index
    %0 = vector.load %arg1[%c0, %c0_0] : memref<8x128xf32, #tpu.memory_space<vmem>>, vector<8x128xf32>
    %1 = arith.mulf %0, %0 : vector<8x128xf32>
    %cst = arith.constant dense<0.000000e+00> : vector<8xf32>
    %2 = vector.multi_reduction <add>, %1, %cst [1] : vector<8x128xf32> to vector<8xf32>
    %3 = vector.shape_cast %2 : vector<8xf32> to vector<8x1xf32>
    %4 = math.sqrt %3 : vector<8x1xf32>
    %cst_1 = arith.constant dense<0.000000e+00> : vector<8xf32>
    %5 = vector.multi_reduction <add>, %0, %cst_1 [1] : vector<8x128xf32> to vector<8xf32>
    %6 = vector.shape_cast %5 : vector<8xf32> to vector<8x1xf32>
    %cst_2 = arith.constant 7.812500e-03 : f32
    %7 = vector.broadcast %cst_2 : f32 to vector<8x1xf32>
    %8 = arith.mulf %6, %7 : vector<8x1xf32>
    %9 = vector.broadcast %8 : vector<8x1xf32> to vector<8x128xf32>
    %10 = arith.subf %0, %9 : vector<8x128xf32>
    %11 = arith.mulf %10, %10 : vector<8x128xf32>
    %cst_3 = arith.constant dense<0.000000e+00> : vector<8xf32>
    %12 = vector.multi_reduction <add>, %11, %cst_3 [1] : vector<8x128xf32> to vector<8xf32>
    %13 = vector.shape_cast %12 : vector<8xf32> to vector<8x1xf32>
    %cst_4 = arith.constant 7.812500e-03 : f32
    %14 = vector.broadcast %cst_4 : f32 to vector<8x1xf32>
    %15 = arith.mulf %13, %14 : vector<8x1xf32>
    %cst_5 = arith.constant 9.99999974E-6 : f32
    %16 = vector.broadcast %cst_5 : f32 to vector<8x1xf32>
    %17 = arith.addf %15, %16 : vector<8x1xf32>
    %18 = math.rsqrt %17 : vector<8x1xf32>
    %19 = vector.broadcast %18 : vector<8x1xf32> to vector<8x128xf32>
    %20 = arith.mulf %10, %19 : vector<8x128xf32>
    %c0_6 = arith.constant 0 : index
    %c0_7 = arith.constant 0 : index
    %21 = vector.load %arg2[%c0_6, %c0_7] : memref<1x128xf32, #tpu.memory_space<vmem>>, vector<1x128xf32>
    %22 = vector.broadcast %21 : vector<1x128xf32> to vector<8x128xf32>
    %23 = arith.mulf %20, %22 : vector<8x128xf32>
    %c0_8 = arith.constant 0 : index
    %c0_9 = arith.constant 0 : index
    %24 = vector.load %arg3[%c0_8, %c0_9] : memref<1x128xf32, #tpu.memory_space<vmem>>, vector<1x128xf32>
    %25 = vector.broadcast %24 : vector<1x128xf32> to vector<8x128xf32>
    %26 = arith.addf %23, %25 : vector<8x128xf32>
    %c0_10 = arith.constant 0 : index
    %c0_11 = arith.constant 0 : index
    %27 = vector.load %arg4[%c0_10, %c0_11] : memref<128x64xf32, #tpu.memory_space<vmem>>, vector<128x64xf32>
    %cst_12 = arith.constant dense<0.000000e+00> : vector<8x64xf32>
    %28 = tpu.matmul %26, %27, %cst_12 {dimension_numbers = #tpu.dot_dimension_numbers<[1], [0], [0], [1], [0, 0, 1, 1], [], []>} : vector<8x128xf32>, vector<128x64xf32>, vector<8x64xf32> -> vector<8x64xf32>
    %c0_13 = arith.constant 0 : index
    %c0_14 = arith.constant 0 : index
    %29 = vector.load %arg5[%c0_13, %c0_14] : memref<1x64xf32, #tpu.memory_space<vmem>>, vector<1x64xf32>
    %30 = vector.broadcast %29 : vector<1x64xf32> to vector<8x64xf32>
    %31 = arith.addf %28, %30 : vector<8x64xf32>
    %32 = math.tanh %31 : vector<8x64xf32>
    %c0_15 = arith.constant 0 : index
    %c0_16 = arith.constant 0 : index
    %33 = vector.load %arg6[%c0_15, %c0_16] : memref<64x256xf32, #tpu.memory_space<vmem>>, vector<64x256xf32>
    %cst_17 = arith.constant dense<0.000000e+00> : vector<8x256xf32>
    %34 = tpu.matmul %32, %33, %cst_17 {dimension_numbers = #tpu.dot_dimension_numbers<[1], [0], [0], [1], [0, 0, 1, 1], [], []>} : vector<8x64xf32>, vector<64x256xf32>, vector<8x256xf32> -> vector<8x256xf32>
    %c0_18 = arith.constant 0 : index
    %c0_19 = arith.constant 0 : index
    %35 = vector.load %arg7[%c0_18, %c0_19] : memref<1x256xf32, #tpu.memory_space<vmem>>, vector<1x256xf32>
    %36 = vector.broadcast %35 : vector<1x256xf32> to vector<8x256xf32>
    %37 = arith.addf %34, %36 : vector<8x256xf32>
    %38 = tpu.iota {dimensions = array<i32: 1>} : vector<8x256xi32>
    %c255_i32 = arith.constant 255 : i32
    %39 = vector.broadcast %c255_i32 : i32 to vector<8x256xi32>
    %40 = arith.cmpi eq, %38, %39 : vector<8x256xi32>
    %41 = vector.shape_cast %4 : vector<8x1xf32> to vector<8x1xf32>
    %42 = vector.broadcast %41 : vector<8x1xf32> to vector<8x256xf32>
    %43 = arith.select %40, %42, %37 : vector<8x256xi1>, vector<8x256xf32>
    %c0_20 = arith.constant 0 : index
    %c0_21 = arith.constant 0 : index
    %44 = vector.load %arg8[%c0_20, %c0_21] : memref<8x256xf32, #tpu.memory_space<vmem>>, vector<8x256xf32>
    tpu.vector_store %arg8[%c0_20, %c0_21], %43 {strides = array<i32>} : memref<8x256xf32, #tpu.memory_space<vmem>>, vector<8x256xf32>,
    return
  }
  func.func @transform_0(%arg0: i32) -> (i32, i32) {
    %c0_i32 = arith.constant 0 : i32
    %c0_i32_0 = arith.constant 0 : i32
    return %arg0, %c0_i32 : i32, i32
  }
  func.func @transform_1(%arg0: i32) -> (i32, i32) {
    %c0_i32 = arith.constant 0 : i32
    %c0_i32_0 = arith.constant 0 : i32
    %c0_i32_1 = arith.constant 0 : i32
    return %c0_i32, %c0_i32_0 : i32, i32
  }
  func.func @transform_2(%arg0: i32) -> (i32, i32) {
    %c0_i32 = arith.constant 0 : i32
    %c0_i32_0 = arith.constant 0 : i32
    %c0_i32_1 = arith.constant 0 : i32
    return %c0_i32, %c0_i32_0 : i32, i32
  }
  func.func @transform_3(%arg0: i32) -> (i32, i32) {
    %c0_i32 = arith.constant 0 : i32
    %c0_i32_0 = arith.constant 0 : i32
    %c0_i32_1 = arith.constant 0 : i32
    return %c0_i32, %c0_i32_0 : i32, i32
  }
  func.func @transform_4(%arg0: i32) -> (i32, i32) {
    %c0_i32 = arith.constant 0 : i32
    %c0_i32_0 = arith.constant 0 : i32
    %c0_i32_1 = arith.constant 0 : i32
    return %c0_i32, %c0_i32_0 : i32, i32
  }
  func.func @transform_5(%arg0: i32) -> (i32, i32) {
    %c0_i32 = arith.constant 0 : i32
    %c0_i32_0 = arith.constant 0 : i32
    %c0_i32_1 = arith.constant 0 : i32
    return %c0_i32, %c0_i32_0 : i32, i32
  }
  func.func @transform_6(%arg0: i32) -> (i32, i32) {
    %c0_i32 = arith.constant 0 : i32
    %c0_i32_0 = arith.constant 0 : i32
    %c0_i32_1 = arith.constant 0 : i32
    return %c0_i32, %c0_i32_0 : i32, i32
  }
  func.func @transform_7(%arg0: i32) -> (i32, i32) {
    %c0_i32 = arith.constant 0 : i32
    %c0_i32_0 = arith.constant 0 : i32
    return %arg0, %c0_i32 : i32, i32
  }
}

</mosaic_0001>

<bundles_post_ra>
// kernel: tpu_custom_call.1
= control target key start
LH: loop header
LB: loop body
LE: loop exit
PB: predicated region body
PF: predicated region fallthrough
CT: control target
= control target key end

     0   :  { %s588_s0 = inlined_call_operand.vmem [shape: f32[8,128], index: 0, kind: input, shape index: {}]   ;;  %s589_s1 = inlined_call_operand.vmem [shape: f32[1,128], index: 1, kind: input, shape index: {}]   ;;  %s590_s2 = inlined_call_operand.vmem [shape: f32[1,128], index: 2, kind: input, shape index: {}]   ;;  %s591_s3 = inlined_call_operand.vmem [shape: f32[128,64], index: 3, kind: input, shape index: {}]   ;;  %s592_s4 = inlined_call_operand.vmem [shape: f32[1,64], index: 4, kind: input, shape index: {}]   ;;  %s593_s5 = inlined_call_operand.vmem [shape: f32[64,256], index: 5, kind: input, shape index: {}]   ;;  %s594_s6 = inlined_call_operand.vmem [shape: f32[1,256], index: 6, kind: input, shape index: {}]   ;;  %s595_s7 = inlined_call_operand.hbm [shape: f32[8,256], index: 7, kind: output, shape index: {}]  }
   0x1   :  { %v462_v0 = vld [vmem:[%s588_s0] sm:$0xff] }
   0x2   :  { %12 = vsyncpa [#allocation3], 0  ;;  %38 = vadd.xlane.f32.xlu0 %v462_v0  ;;  %v65_v1 = vld [vmem:[%s591_s3] sm:$0xff]  ;;  %v66_v2 = vld [vmem:[%s591_s3 + $0x8] sm:$0xff]  ;;  %v415_v4 = vmov 0.0|0.0   ;;  %vm416_vm0 = vmmov 0  }
   0x3   :  { %v67_v3 = vld [vmem:[%s591_s3 + $0x10] sm:$0xff]  ;;  %341 = vmatprep.subr.bf16.mxu0 %v415_v4  ;;  %v342_v5 = vpack.c.bf16 %v66_v2, %v65_v1  ;;  %v68_v6 = vld [vmem:[%s591_s3 + $0x18] sm:$0xff]  ;;  %v69_v8 = vld [vmem:[%s591_s3 + $0x20] sm:$0xff]  ;;  %v417_v23 = vmov 0.0   ;;  %v28_v1 = vmul.f32 %v462_v0, %v462_v0  ;;  %vm187_vm1 = vcmask 523264  }
   0x4   :  { %v345_v7 = vpack.c.bf16 %v68_v6, %v67_v3  ;;  %v70_v9 = vld [vmem:[%s591_s3 + $0x28] sm:$0xff]  ;;  %v71_v15 = vld [vmem:[%s591_s3 + $0x30] sm:$0xff]  ;;  %v72_v16 = vld [vmem:[%s591_s3 + $0x38] sm:$0xff]  ;;  %338 = vmatprep.mubr.msk.f32.mxu0 %vm416_vm0, %v417_v23  ;;  %255 = vmatprep.mubr.f32.mxu1 %v417_v23 }
   0x5   :  { %343 = vmatpush3.bf16.msra.mxu0 %v342_v5  ;;  %v348_v10 = vpack.c.bf16 %v70_v9, %v69_v8  ;;  %v351_v17 = vpack.c.bf16 %v72_v16, %v71_v15  ;;  %v73_v18 = vld [vmem:[%s591_s3 + $0x40] sm:$0xff]  ;;  %v74_v19 = vld [vmem:[%s591_s3 + $0x48] sm:$0xff]  ;;  %v75_v21 = vld [vmem:[%s591_s3 + $0x50] sm:$0xff]  ;;  %29 = vadd.xlane.f32.xlu1 %v28_v1  ;;  %v177_v8 = vlaneseq }
   0x6   :  { %344 = vmatprep.subr.bf16.mxu0 %v415_v4  ;;  %v354_v20 = vpack.c.bf16 %v74_v19, %v73_v18  ;;  %v76_v22 = vld [vmem:[%s591_s3 + $0x58] sm:$0xff]  ;;  %v77_v25 = vld [vmem:[%s591_s3 + $0x60] sm:$0xff]  ;;  %v78_v26 = vld [vmem:[%s591_s3 + $0x68] sm:$0xff] }
   0x7   :  { %v357_v24 = vpack.c.bf16 %v76_v22, %v75_v21  ;;  %v360_v27 = vpack.c.bf16 %v78_v26, %v77_v25  ;;  %v79_v28 = vld [vmem:[%s591_s3 + $0x70] sm:$0xff]  ;;  %v80_v29 = vld [vmem:[%s591_s3 + $0x78] sm:$0xff]  ;;  %v160_v31 = vld [vmem:[%s593_s5 + $0x8] sm:$0xff]  ;;  %v178_v9 = vshrl.u32 %v177_v8, 7 }
   0x8   :  { %v363_v30 = vpack.c.bf16 %v80_v29, %v79_v28  ;;  %v162_v32 = vld [vmem:[%s593_s5 + $0x18] sm:$0xff]  ;;  %v159_v33 = vld [vmem:[%s593_s5] sm:$0xff]  ;;  %v161_v35 = vld [vmem:[%s593_s5 + $0x10] sm:$0xff] }
   0x9   :  { %346 = vmatpush3.bf16.msra.mxu0 %v345_v7  ;;  %v365_v34 = vpack.c.bf16 %v162_v32, %v160_v31  ;;  %v367_v36 = vpack.c.bf16 %v161_v35, %v159_v33  ;;  %v285_v41 = vld [vmem:[%s589_s1] ss:$0 sm:$0xff]  ;;  %v164_v46 = vld [vmem:[%s593_s5 + $0x28] sm:$0xff]  ;;  %v166_v47 = vld [vmem:[%s593_s5 + $0x38] sm:$0xff] }
   0xa   :  { %347 = vmatprep.subr.bf16.mxu0 %v415_v4  ;;  %v286_v43 = vld [vmem:[%s590_s2] ss:$0 sm:$0xff]  ;;  %v369_v48 = vpack.c.bf16 %v166_v47, %v164_v46  ;;  %v165_v50 = vld [vmem:[%s593_s5 + $0x30] sm:$0xff]  ;;  %v168_v52 = vld [vmem:[%s593_s5 + $0x48] sm:$0xff] }
   0xb   :  { %366 = vmatprep.subr.bf16.mxu1 %v365_v34  ;;  %v163_v49 = vld [vmem:[%s593_s5 + $0x20] sm:$0xff]  ;;  %v170_v53 = vld [vmem:[%s593_s5 + $0x58] sm:$0xff]  ;;  %v169_v56 = vld [vmem:[%s593_s5 + $0x50] sm:$0xff] }
   0xc   :  { %368 = vmatpush1.bf16.msra.mxu1 %v367_v36  ;;  %v371_v51 = vpack.c.bf16 %v165_v50, %v163_v49  ;;  %v167_v54 = vld [vmem:[%s593_s5 + $0x40] sm:$0xff]  ;;  %v373_v55 = vpack.c.bf16 %v170_v53, %v168_v52  ;;  %v172_v57 = vld [vmem:[%s593_s5 + $0x68] sm:$0xff]  ;;  %v174_v58 = vld [vmem:[%s593_s5 + $0x78] sm:$0xff] }
   0xd   :  { %349 = vmatpush3.bf16.msra.mxu0 %v348_v10  ;;  %370 = vmatprep.subr.bf16.mxu1 %v369_v48  ;;  %v375_v59 = vpack.c.bf16 %v169_v56, %v167_v54  ;;  %v377_v60 = vpack.c.bf16 %v174_v58, %v172_v57  ;;  %v171_v61 = vld [vmem:[%s593_s5 + $0x60] sm:$0xff]  ;;  %v173_v62 = vld [vmem:[%s593_s5 + $0x70] sm:$0xff] }
   0xe   :  { %350 = vmatprep.subr.bf16.mxu0 %v415_v4  ;;  %v379_v63 = vpack.c.bf16 %v173_v62, %v171_v61  ;;  %v287_v2 = vld [vmem:[%s592_s4] ss:$0 sm:$0xff]  ;;  %s418_s4 = smov [#allocation2]  }
   0xf   :  { %s277_s21 = sshll.u32 %s418_s4, 4  ;;  %s278_s21 = int_to_ptr.vmem [resolvable:$true] %s277_s21 }
  0x10   :  { %372 = vmatpush1.bf16.msra.mxu1 %v371_v51  ;;  %p396_p1 = scmp.lt.s32.totalorder %s278_s21, %s278_s21 }
  0x11   :  { %352 = vmatpush3.bf16.msra.mxu0 %v351_v17  ;;  %374 = vmatprep.subr.bf16.mxu1 %v373_v55 }
  0x12   :  { %353 = vmatprep.subr.bf16.mxu0 %v415_v4 }
  0x14   :  { %376 = vmatpush1.bf16.msra.mxu1 %v375_v59 }
  0x15   :  { %355 = vmatpush3.bf16.msra.mxu0 %v354_v20  ;;  %378 = vmatprep.subr.bf16.mxu1 %v377_v60 }
  0x16   :  { %356 = vmatprep.subr.bf16.mxu0 %v415_v4 }
  0x18   :  { %380 = vmatpush1.bf16.msra.mxu1 %v379_v63 }
  0x19   :  { %358 = vmatpush3.bf16.msra.mxu0 %v357_v24 }
  0x1a   :  { %359 = vmatprep.subr.bf16.mxu0 %v415_v4 }
  0x1d   :  { %361 = vmatpush3.bf16.msra.mxu0 %v360_v27 }
  0x1e   :  { %362 = vmatprep.subr.bf16.mxu0 %v415_v4 }
  0x21   :  { %364 = vmatpush3.bf16.msra.mxu0 %v363_v30 }
  0x8f   :  { %v39_v11 = vpop.xlane.xlu0 %38 }
  0x90   :  { %v40_v12 = vmul.f32 0.0078125, %v39_v11  ;;  %v179_v11 = vsub.s32 0, %v178_v9 }
  0x92   :  { %v41_v13 = vsub.f32 %v462_v0, %v40_v12  ;;  %v30_v7 = vpop.xlane.xlu1 %29  ;;  %v263_v12 = vand.u32 127, %v177_v8  ;;  %v175_v0 = vld [vmem:[%s594_s6] sm:$0x3]  ;;  %s391_s6 = scalar_lea.vmem %s278_s21, 256 }
  0x93   :  { %vm33_vm2 = vcmp.eq.f32.partialorder %v30_v7, inf  ;;  %v180_v15 = vrot.slane %v175_v0, %v179_v11  ;;  %v36_v18 = vand.u32 2147483648, %v30_v7  ;;  %vm35_vm3 = vcmp.eq.f32.partialorder %v30_v7, 0.0  ;;  %p392_p0 = scmp.ne.s32.totalorder %s278_s21, %s391_s6  ;;  %p397_p2 = scmp.lt.s32.totalorder %s391_s6, %s391_s6 }
  0x94   :  { %v42_v14 = vmul.f32 %v41_v13, %v41_v13  ;;  %v264_v16 = vadd.s32 128, %v263_v12 }
  0x95   :  { %p398_p3 = por %p397_p2, %p396_p1 }
  0x96   :  { %43 = vadd.xlane.f32.xlu0 %v42_v14  ;;  %vm266_vm4 = vcmp.eq.s32.totalorder %v264_v16, 255 }
  0x97   :  { %p399_p4 = pnand %p398_p3, %p392_p0 }
 0x123   :  { %v44_v37 = vpop.xlane.xlu0 %43 }
 0x124   :  { %v45_v38 = vmul.f32 0.0078125, %v44_v37 }
 0x126   :  { %v46_v39 = vadd.f32 1e-05, %v45_v38 }
 0x128   :  { %385 = vrsqrt.f32 %v46_v39 }
 0x132   :  { %v386_v40 = vpop.eup %385 }
 0x133   :  { %v48_v42 = vmul.f32 %v386_v40, %v41_v13  ;;  %v183_v13 = vsub.s32 1, %v178_v9 }
 0x135   :  { %v56_v44 = vmul.f32 %v285_v41, %v48_v42  ;;  %v184_v17 = vrot.slane %v175_v0, %v183_v13 }
 0x137   :  { %v64_v45 = vadd.f32 %v286_v43, %v56_v44 }
 0x139   :  { %339 = vmatmul.mubr.f32.vlgmr.msra.gmra.mrb[0].mxu0 %v64_v45 }
 0x20c   :  { %v154_v3 = vpop.f32.mrb[0].mxu0 }
 0x20d   :  { %v155_v4 = vadd.f32 %v287_v2, %v154_v3  ;;  %v340_v5 = vpop.f32.mrb[1].mxu0 }
 0x20f   :  { %387 = vtanh.f32 %v155_v4 }
 0x210   :  { %389 = vrsqrt.f32 %v30_v7 }
 0x219   :  { %v388_v6 = vpop.eup %387 }
 0x21a   :  { %288 = vmatmul.mubr.msk.f32.vlgmr.msra.gmra.mrb[0].mxu1 %vm187_vm1, %v388_v6  ;;  %v390_v10 = vpop.eup %389 }
 0x21b   :  { %v32_v14 = vmul.f32 %v390_v10, %v30_v7 }
 0x21d   :  { %v34_v20 = vsel %vm33_vm2, %v30_v7, %v32_v14 }
 0x21e   :  { %v37_v24 = vsel %vm35_vm3, %v36_v18, %v34_v20 }
 0x2ed   :  { %v257_v19 = vpop.f32.mrb[0].mxu1 }
 0x2ee   :  { %v258_v21 = vadd.f32 %v257_v19, %v180_v15  ;;  %v259_v22 = vpop.f32.mrb[1].mxu1 }
 0x2ef   :  { %v260_v23 = vadd.f32 %v259_v22, %v184_v17 }
 0x2f0   :  { %269 = vst [vmem:[#allocation2] sm:$0xff] %v258_v21 }
 0x2f1   :  { %v268_v25 = vsel %vm266_vm4, %v37_v24, %v260_v23 }
 0x2f2   :  { %270 = vst [vmem:[#allocation2 + $0x8] sm:$0xff] %v268_v25 }
 0x2f3   :  { %402 = shalt.err (!%p399_p4)
}
 0x2f4   :  { %s403_s24 = scalar_lea.hbm %s595_s7, 256 }
 0x2f5   :  { %p404_p5 = scmp.ne.s32.totalorder %s595_s7, %s403_s24  ;;  %p407_p6 = scmp.lt.u32.totalorder %s403_s24, %s595_s7 }
 0x2f7   :  { %p409_p7 = pnand %p407_p6, %p404_p5 }
 0x2f9   :  { %412 = shalt.err (!%p409_p7)
}
 0x2fa   :  { %280 = dma.vmem_to_hbm [thread:$0]  %s278_s21, 256, %s595_s7, [#allocation3]  }
 0x2fb   :  { %413 = dma.done.wait [#allocation3], 256  }
 0x2fc   :  { %414 = vsyncadd [#allocation3], 4294967040 }
 0x2fd   :  { %284 = vsyncpa [#allocation3], 1 }

</bundles_post_ra>
